<compile_context>
chip_gen: v5e
topology: v5e:2x2
jax: 0.10.0
libtpu: 0.0.40
codegen_flags: <defaults>
</compile_context>

<pallas_src>
import jax
import jax.numpy as jnp
from jax.experimental import pallas as pl
from jax.experimental.pallas import tpu as pltpu


# ---------------------------------------------------------------------------
# Kernels
# ---------------------------------------------------------------------------

_DOT_DIMS = (((1,), (0,)), ((), ()))   # plain (M,K) @ (K,N) contraction, no RHS transpose


def _linear_kernel_single(x_ref, w_ref, b_ref, o_ref):
    """One-shot tile: out = x @ w + bias (no K-reduction grid axis)."""
    acc = jax.lax.dot_general(x_ref[...], w_ref[...],
                              dimension_numbers=_DOT_DIMS,
                              preferred_element_type=jnp.float32)
    o_ref[...] = (acc + b_ref[...].astype(jnp.float32)).astype(o_ref.dtype)


def _linear_kernel_f32(x_ref, w_ref, b_ref, o_ref):
    """K-tiled kernel, f32 output: accumulate directly into the resident
    output block (its block index (i, j) is constant across k)."""
    k = pl.program_id(2)

    @pl.when(k == 0)
    def _():
        # Init with the broadcast bias -> no bias add in the epilogue.
        o_ref[...] = jnp.broadcast_to(b_ref[...].astype(o_ref.dtype), o_ref.shape)

    o_ref[...] += jax.lax.dot_general(x_ref[...], w_ref[...],
                                      dimension_numbers=_DOT_DIMS,
                                      preferred_element_type=jnp.float32)


def _linear_kernel_acc(x_ref, w_ref, b_ref, o_ref, acc_ref):
    """K-tiled kernel with an f32 VMEM accumulator (non-f32 output dtypes)."""
    k = pl.program_id(2)

    @pl.when(k == 0)
    def _():
        acc_ref[...] = jnp.broadcast_to(b_ref[...].astype(jnp.float32), acc_ref.shape)

    acc_ref[...] += jax.lax.dot_general(x_ref[...], w_ref[...],
                                        dimension_numbers=_DOT_DIMS,
                                        preferred_element_type=jnp.float32)

    @pl.when(k == pl.num_programs(2) - 1)
    def _():
        o_ref[...] = acc_ref[...].astype(o_ref.dtype)


# ---------------------------------------------------------------------------
# Tiling helpers
# ---------------------------------------------------------------------------

def _round_up(x, m):
    return ((x + m - 1) // m) * m


def _cdiv(a, b):
    return (a + b - 1) // b


def _choose_tile(dim, target, align):
    """Tile size (multiple of `align`, <= ~target) and the padded dim."""
    if dim <= target:
        tile = _round_up(dim, align)
        return tile, tile
    nt = _cdiv(dim, target)
    tile = _round_up(_cdiv(dim, nt), align)
    return tile, tile * nt


def _compiler_params(semantics, vmem_bytes):
    # Explicit scoped-VMEM limit: footprint + headroom, capped well below
    # v7x's 64 MiB physical VMEM (and raised above v5e's 16 MiB default).
    limit = int(min(max(vmem_bytes + (8 << 20), 16 << 20), 48 << 20))
    return pltpu.CompilerParams(dimension_semantics=semantics,
                                vmem_limit_bytes=limit)


# ---------------------------------------------------------------------------
# Parameter setup (one-time) + forward
# ---------------------------------------------------------------------------

def prepare_linear_params(weight, bias, *, tn_target=512, tk_target=512):
    """One-time parameter setup, amortized over every forward call.

    weight: (out, in) PyTorch layout; bias: (out,).
    Converts the weight to (K, N) layout and pads it / the bias once.
    """
    N, K = weight.shape
    w_kn = weight.T                      # (K, N): done once, never per call
    b2d = bias.reshape(1, N)

    if K <= tk_target and N <= tn_target:
        # Full-dim K/N blocks (exempt from the (8,128) rule): no padding and
        # no K-reduction grid axis needed.
        return dict(small_kn=True, N=N, K=K, w=w_kn, b=b2d)

    tn, Np = _choose_tile(N, tn_target, 128)
    tk, Kp = _choose_tile(K, tk_target, 128)
    if (Kp, Np) != (K, N):
        w_kn = jnp.pad(w_kn, ((0, Kp - K), (0, Np - N)))
    if Np != N:
        b2d = jnp.pad(b2d, ((0, 0), (0, Np - N)))
    return dict(small_kn=False, N=N, K=K, Np=Np, Kp=Kp, tn=tn, tk=tk,
                w=w_kn, b=b2d)


def linear_forward(x, params, *, tm_target=512):
    """x: (B, in).  Returns x @ weight.T + bias with shape (B, out)."""
    B, K = x.shape
    assert K == params["K"], (K, params["K"])
    N = params["N"]
    w, b = params["w"], params["b"]
    itemsize = 4  # budget VMEM with f32 (upper bound)

    if params["small_kn"]:
        if B <= tm_target:
            # Whole problem is a single tile: no padding, no slicing.
            vmem = 2 * (B * K + K * N + N + B * N) * itemsize
            return pl.pallas_call(
                _linear_kernel_single,
                out_shape=jax.ShapeDtypeStruct((B, N), x.dtype),
                grid=(1,),
                in_specs=[
                    pl.BlockSpec((B, K), lambda i: (0, 0)),
                    pl.BlockSpec((K, N), lambda i: (0, 0)),
                    pl.BlockSpec((1, N), lambda i: (0, 0)),
                ],
                out_specs=pl.BlockSpec((B, N), lambda i: (0, 0)),
                compiler_params=_compiler_params(("arbitrary",), vmem),
            )(x, w, b)

        # Large batch, small K/N: tile over M only with full-dim K/N blocks.
        tm, Mp = _choose_tile(B, tm_target, 8)
        xp = x if Mp == B else jnp.pad(x, ((0, Mp - B), (0, 0)))
        vmem = 2 * (tm * K + K * N + N + tm * N) * itemsize
        out_p = pl.pallas_call(
            _linear_kernel_single,
            out_shape=jax.ShapeDtypeStruct((Mp, N), x.dtype),
            grid=(Mp // tm,),
            in_specs=[
                pl.BlockSpec((tm, K), lambda i: (i, 0)),
                pl.BlockSpec((K, N), lambda i: (0, 0)),
                pl.BlockSpec((1, N), lambda i: (0, 0)),
            ],
            out_specs=pl.BlockSpec((tm, N), lambda i: (i, 0)),
            compiler_params=_compiler_params(("parallel",), vmem),
        )(xp, w, b)
        return out_p if Mp == B else out_p[:B]

    # General (M, N, K)-tiled path; K is the last ("arbitrary") grid axis.
    Np, Kp, tn, tk = params["Np"], params["Kp"], params["tn"], params["tk"]
    tm, Mp = _choose_tile(B, tm_target, 8)
    grid_m, grid_n, grid_k = Mp // tm, Np // tn, Kp // tk

    # Megacore (v7x: 2 TensorCores): keep at least one parallel axis >= 2.
    if grid_m == 1 and grid_n == 1:
        if B >= 16:
            tm = _round_up(_cdiv(B, 2), 8)
            Mp, grid_m = 2 * tm, 2
        elif tn >= 256 and (tn // 2) % 128 == 0:
            tn = tn // 2
            grid_n = Np // tn

    xp = x if (Mp == B and Kp == K) else jnp.pad(x, ((0, Mp - B), (0, Kp - K)))

    f32_out = jnp.dtype(x.dtype) == jnp.dtype(jnp.float32)
    kernel = _linear_kernel_f32 if f32_out else _linear_kernel_acc
    scratch = [] if f32_out else [pltpu.VMEM((tm, tn), jnp.float32)]
    vmem = (2 * (tm * tk + tk * tn + tn) + 2 * tm * tn
            + (0 if f32_out else tm * tn)) * itemsize

    out_p = pl.pallas_call(
        kernel,
        out_shape=jax.ShapeDtypeStruct((Mp, Np), x.dtype),
        grid=(grid_m, grid_n, grid_k),
        in_specs=[
            pl.BlockSpec((tm, tk), lambda i, j, k: (i, k)),   # x tile
            pl.BlockSpec((tk, tn), lambda i, j, k: (k, j)),   # weight (K, N) tile
            pl.BlockSpec((1, tn), lambda i, j, k: (0, j)),    # bias tile
        ],
        out_specs=pl.BlockSpec((tm, tn), lambda i, j, k: (i, j)),
        scratch_shapes=scratch,
        compiler_params=_compiler_params(
            ("parallel", "parallel", "arbitrary"), vmem),
    )(xp, w, b)

    return out_p[:B, :N] if (Mp, Np) != (B, N) else out_p


# ---------------------------------------------------------------------------
# Self-test
# ---------------------------------------------------------------------------

if __name__ == "__main__":
    key = jax.random.PRNGKey(0)

    def run_case(batch, input_size, output_size, case_key,
                 tm_target=512, tn_target=512, tk_target=512):
        kx, kw, kb = jax.random.split(case_key, 3)
        x = jax.random.normal(kx, (batch, input_size), dtype=jnp.float32)
        bound = 1.0 / (input_size ** 0.5)
        weight = jax.random.uniform(kw, (output_size, input_size),
                                    dtype=jnp.float32, minval=-bound, maxval=bound)
        bias = jax.random.uniform(kb, (output_size,),
                                  dtype=jnp.float32, minval=-bound, maxval=bound)

        # One-time parameter setup (transpose to (K, N) + pad), then forward.
        params = prepare_linear_params(weight, bias,
                                       tn_target=tn_target, tk_target=tk_target)
        out = linear_forward(x, params, tm_target=tm_target)
        jax.block_until_ready(out)

        ref = jnp.dot(x, weight.T, precision=jax.lax.Precision.HIGHEST) + bias
        assert out.shape == (batch, output_size), out.shape
        assert jnp.allclose(out, ref, atol=1e-4, rtol=1e-4), \
            float(jnp.max(jnp.abs(out - ref)))

    keys = jax.random.split(key, 4)
    # Toy shape implied by the module: single-tile fast path (no pad / slice).
    run_case(4, 32, 16, keys[0])
    # Large batch, small features: M-only grid with full-dim K/N blocks.
    run_case(300, 64, 48, keys[1], tm_target=128)
    # Full (M, N, K) tiled grid (2, 2, 3); forced small tile targets.
    run_case(256, 384, 256, keys[2], tm_target=128, tn_target=128, tk_target=128)
    # Ragged dims: exercises padding, K reduction and the megacore M-split.
    run_case(36, 200, 72, keys[3], tm_target=128, tn_target=128, tk_target=128)

    print("KERNEL_OK")
</pallas_src>

<mosaic_0001>
module attributes {stable_mosaic.version = 11 : i64} {
  func.func @_linear_kernel_single(%arg0: i32, %arg1: memref<4x32xf32, #tpu.memory_space<vmem>>, %arg2: memref<32x16xf32, #tpu.memory_space<vmem>>, %arg3: memref<1x16xf32, #tpu.memory_space<vmem>>, %arg4: memref<4x16xf32, #tpu.memory_space<vmem>>) attributes {dimension_semantics = [#tpu.dimension_semantics<arbitrary>], iteration_bounds = array<i64: 1>, scalar_prefetch = 0 : i64, scratch_operands = 0 : i64, tpu.core_type = #tpu.core_type<tc>, window_params = [{pipeline_mode = #tpu.pipeline_mode<synchronous>, transform_indices = @transform_0, window_bounds = array<i64: 4, 32>}, {pipeline_mode = #tpu.pipeline_mode<synchronous>, transform_indices = @transform_1, window_bounds = array<i64: 32, 16>}, {pipeline_mode = #tpu.pipeline_mode<synchronous>, transform_indices = @transform_2, window_bounds = array<i64: 1, 16>}, {pipeline_mode = #tpu.pipeline_mode<synchronous>, transform_indices = @transform_3, window_bounds = array<i64: 4, 16>}]} {
    %c0 = arith.constant 0 : index
    %c0_0 = arith.constant 0 : index
    %0 = vector.load %arg1[%c0, %c0_0] : memref<4x32xf32, #tpu.memory_space<vmem>>, vector<4x32xf32>
    %c0_1 = arith.constant 0 : index
    %c0_2 = arith.constant 0 : index
    %1 = vector.load %arg2[%c0_1, %c0_2] : memref<32x16xf32, #tpu.memory_space<vmem>>, vector<32x16xf32>
    %cst = arith.constant dense<0.000000e+00> : vector<4x16xf32>
    %2 = tpu.matmul %0, %1, %cst {dimension_numbers = #tpu.dot_dimension_numbers<[1], [0], [0], [1], [0, 0, 1, 1], [], []>} : vector<4x32xf32>, vector<32x16xf32>, vector<4x16xf32> -> vector<4x16xf32>
    %c0_3 = arith.constant 0 : index
    %c0_4 = arith.constant 0 : index
    %3 = vector.load %arg3[%c0_3, %c0_4] : memref<1x16xf32, #tpu.memory_space<vmem>>, vector<1x16xf32>
    %4 = vector.broadcast %3 : vector<1x16xf32> to vector<4x16xf32>
    %5 = arith.addf %2, %4 : vector<4x16xf32>
    %c0_5 = arith.constant 0 : index
    %c0_6 = arith.constant 0 : index
    %6 = vector.load %arg4[%c0_5, %c0_6] : memref<4x16xf32, #tpu.memory_space<vmem>>, vector<4x16xf32>
    tpu.vector_store %arg4[%c0_5, %c0_6], %5 {strides = array<i32>} : memref<4x16xf32, #tpu.memory_space<vmem>>, vector<4x16xf32>,
    return
  }
  func.func @transform_0(%arg0: i32) -> (i32, i32) {
    %c0_i32 = arith.constant 0 : i32
    %c0_i32_0 = arith.constant 0 : i32
    %c0_i32_1 = arith.constant 0 : i32
    return %c0_i32, %c0_i32_0 : i32, i32
  }
  func.func @transform_1(%arg0: i32) -> (i32, i32) {
    %c0_i32 = arith.constant 0 : i32
    %c0_i32_0 = arith.constant 0 : i32
    %c0_i32_1 = arith.constant 0 : i32
    return %c0_i32, %c0_i32_0 : i32, i32
  }
  func.func @transform_2(%arg0: i32) -> (i32, i32) {
    %c0_i32 = arith.constant 0 : i32
    %c0_i32_0 = arith.constant 0 : i32
    %c0_i32_1 = arith.constant 0 : i32
    return %c0_i32, %c0_i32_0 : i32, i32
  }
  func.func @transform_3(%arg0: i32) -> (i32, i32) {
    %c0_i32 = arith.constant 0 : i32
    %c0_i32_0 = arith.constant 0 : i32
    %c0_i32_1 = arith.constant 0 : i32
    return %c0_i32, %c0_i32_0 : i32, i32
  }
}

</mosaic_0001>

<bundles_post_ra>
// kernel: tpu_custom_call.1
= control target key start
LH: loop header
LB: loop body
LE: loop exit
PB: predicated region body
PF: predicated region fallthrough
CT: control target
= control target key end

     0   :  { %s137_s0 = inlined_call_operand.vmem [shape: f32[4,32], index: 0, kind: input, shape index: {}]   ;;  %s138_s1 = inlined_call_operand.vmem [shape: f32[32,16], index: 1, kind: input, shape index: {}]   ;;  %s139_s2 = inlined_call_operand.vmem [shape: f32[1,16], index: 2, kind: input, shape index: {}]   ;;  %s140_s3 = inlined_call_operand.hbm [shape: f32[4,16], index: 3, kind: output, shape index: {}]  }
   0x1   :  { %v19_v0 = vld [vmem:[%s138_s1 + $0x18] sm:$0xff]  ;;  %v18_v1 = vld [vmem:[%s138_s1 + $0x10] sm:$0xff]  ;;  %v17_v2 = vld [vmem:[%s138_s1 + $0x8] sm:$0xff] }
   0x2   :  { %40 = vmatpush.msra.mxu0 %v19_v0 }
   0x3   :  { %8 = vsyncpa [#allocation3], 0  ;;  %v16_v3 = vld [vmem:[%s138_s1] sm:$0xff]  ;;  %vm24_vm0 = vcmask 261120   ;;  %s95_s24 = smov [#allocation2]   ;;  %s57_s28 = sshll.u32 %s140_s3, 4  ;;  %s58_s28 = int_to_ptr.hbm [resolvable:$true] %s57_s28 }
   0x4   :  { %41 = vmatpush.msra.mxu0 %v18_v1  ;;  %v15_v4 = vld [vmem:[%s137_s0] sm:$0xf]  ;;  %s55_s25 = sshll.u32 %s95_s24, 4  ;;  %vm48_vm1 = vcmask 125952   ;;  %s56_s25 = int_to_ptr.vmem [resolvable:$true] %s55_s25 }
   0x5   :  { %v68_v5 = vld [vmem:[%s139_s2] ss:$0 sm:$0xff] }
   0x6   :  { %42 = vmatpush.msra.mxu0 %v17_v2 }
   0x8   :  { %43 = vmatpush.msra.mxu0 %v16_v3 }
   0x9   :  { %66 = vmatmul.msk.f32.vlgmr.msra.gmra.mxu0 %vm24_vm0, %v15_v4 }
  0x86   :  { %v45_v6 = vpop.f32.mrf.mxu0 }
  0x87   :  { %v46_v7 = vadd.f32 %v68_v5, %v45_v6 }
  0x89   :  { %49 = vst.msk [vmem:[#allocation2] sm:$0xf] %vm48_vm1, %v46_v7 }
  0x8a   :  { %60 = dma.vmem_to_hbm [thread:$0]  %s56_s25, 64, %s58_s28, [#allocation3]  }
  0x8b   :  { %93 = dma.done.wait [#allocation3], 64  }
  0x8c   :  { %94 = vsyncadd [#allocation3], 4294967232 }
  0x8d   :  { %65 = vsyncpa [#allocation3], 1 }

</bundles_post_ra>
